<compile_context>
chip_gen: v7x
topology: tpu7x:2x2x1
jax: 0.10.0
libtpu: 0.0.40
codegen_flags: <defaults>
</compile_context>

<pallas_src>
import jax
import jax.numpy as jnp
from jax.experimental import pallas as pl
from jax.experimental.pallas import tpu as pltpu


# Explicit core-split semantics (fall back to strings if unavailable).
_CORE_PARALLEL = getattr(pltpu, "CORE_PARALLEL", "parallel")
_ARBITRARY = getattr(pltpu, "ARBITRARY", "arbitrary")


def _tpu_info():
    try:
        return pltpu.get_tpu_info()
    except Exception:
        return None


def _vmem_capacity_bytes() -> int:
    info = _tpu_info()
    cap = getattr(info, "vmem_capacity_bytes", None)
    if isinstance(cap, int) and cap > 0:
        return cap
    return 64 * 1024 * 1024          # conservative (v7x per-core)


def _num_tensorcores() -> int:
    """Best-effort TensorCore count per chip (2 on v7x, 1 on v5e/v6e)."""
    info = _tpu_info()
    for attr in ("num_tensorcores", "tensorcores_per_chip", "tensorcore_count"):
        v = getattr(info, attr, None)
        if isinstance(v, int) and v >= 1:
            return v
    try:
        kind = jax.devices()[0].device_kind.lower()
    except Exception:
        kind = ""
    if "v7" in kind or "7x" in kind:
        return 2
    return 1


def _make_fbeta_kernel(beta2: float, eps: float, tile_rows: int,
                       tiles_per_chunk: int, n_rows: int, num_tiles: int,
                       needs_mask: bool):
    """Kernel computing a per-chunk partial sum of per-sample f-beta scores."""

    def fbeta_kernel(x_ref, t_ref, o_ref):
        pi = pl.program_id(0)          # chunk index (core-parallel on v7x)
        ti = pl.program_id(1)          # tile within chunk ("arbitrary" / accum)

        @pl.when(ti == 0)
        def _init():
            o_ref[...] = jnp.zeros_like(o_ref)

        x = x_ref[...].astype(jnp.float32)      # (TN, C)
        tgt = t_ref[...].astype(jnp.float32)    # (TN, C)

        s = jax.nn.sigmoid(x)                   # torch.sigmoid(inputs)

        # Lane reductions, kept 2-D (TN, 1) to stay in a clean sublane layout.
        tp = jnp.sum(s * tgt, axis=1, keepdims=True)
        p_sum = jnp.sum(s, axis=1, keepdims=True)
        t_sum = jnp.sum(tgt, axis=1, keepdims=True)

        # Keep the exact three-divide form of the PyTorch module (eps parity).
        precision = tp / (p_sum + eps)
        recall = tp / (t_sum + eps)
        fb = (precision * recall) / (precision * beta2 + recall + eps)  # (TN,1)

        if not needs_mask:
            # Batch divides evenly and there are no duplicated clamped tiles:
            # no masking anywhere.
            o_ref[...] = o_ref[...] + jnp.sum(fb)
        else:
            tile_idx = pi * tiles_per_chunk + ti

            @pl.when(tile_idx < num_tiles - 1)
            def _interior():
                o_ref[...] = o_ref[...] + jnp.sum(fb)

            @pl.when(tile_idx >= num_tiles - 1)
            def _edge():
                # Mask rows past the true batch size (ragged last tile and
                # clamped duplicate tiles).  jnp.where does not propagate
                # garbage/NaN from the unselected branch.
                rows = tile_idx * tile_rows + jax.lax.broadcasted_iota(
                    jnp.int32, fb.shape, 0)
                o_ref[...] = o_ref[...] + jnp.sum(
                    jnp.where(rows < n_rows, fb, 0.0))

    return fbeta_kernel


def fbeta_loss(inputs: jax.Array, target: jax.Array, beta: float = 1.0, *,
               max_tile_rows: int | None = None) -> jax.Array:
    """Pallas TPU implementation of FBetaLoss.forward.

    inputs, target: (N, C) arrays (any float/int dtype).  Returns scalar f32.

    Note: the kernel upcasts in-kernel, so callers should keep inputs/targets
    in their storage dtype (e.g. bf16 logits, int8/bool binary targets) —
    casting in the wrapper would only add HBM traffic.
    """
    assert inputs.shape == target.shape and inputs.ndim == 2
    N, C = inputs.shape
    eps = 1e-08
    beta2 = float(beta) ** 2

    # ---- tile sizing against the scoped-VMEM budget of this chip ----------
    vmem_cap = _vmem_capacity_bytes()
    # 96 MiB scoped on 128 MiB chips (v5e/v6e), 48 MiB on v7x (64 MiB).
    vmem_limit = int(min(vmem_cap * 3 // 4, 100 * 1024 * 1024))

    c_pad = max(128, ((C + 127) // 128) * 128)     # lane padding
    # Per-row VMEM cost:
    #   * 2 pipeline buffers per input, both inputs resident simultaneously.
    #   * ~4 f32 (TN, c_pad) in-kernel temporaries (x, t, sigmoid, s*t).
    #   * a few lane-padded (TN, 1) keepdims temporaries.
    bytes_per_row = (
        2 * c_pad * (inputs.dtype.itemsize + target.dtype.itemsize)
        + 4 * c_pad * 4
        + 4 * 128 * 4
    )
    reserve = 4 * 1024 * 1024                      # misc scratch / semaphores
    budget_rows = max(8, (vmem_limit - reserve) // bytes_per_row)

    tn = int(budget_rows)
    if max_tile_rows is not None:
        tn = min(tn, int(max_tile_rows))
    if tn >= N:
        tn = N                                     # single tile: block == array
    else:
        tn = max(32, (tn // 32) * 32)              # covers f32/bf16/int8 tiles
        if tn >= N:
            tn = N

    num_tiles = pl.cdiv(N, tn)

    # Only split the batch across chunks on chips with >1 TensorCore (v7x).
    n_cores = _num_tensorcores()
    n_chunks = n_cores if (n_cores > 1 and num_tiles >= n_cores) else 1
    tiles_per_chunk = (num_tiles + n_chunks - 1) // n_chunks

    needs_mask = (num_tiles * tn != N) or (n_chunks * tiles_per_chunk != num_tiles)

    kernel = _make_fbeta_kernel(beta2, eps, tn, tiles_per_chunk, N,
                                num_tiles, needs_mask)

    if n_chunks == 1:
        def in_map(pi, ti):                        # no clamp on the hot path
            return (ti, 0)
        dim_sem = ("arbitrary", "arbitrary")
    else:
        def in_map(pi, ti):
            # Clamp so a duplicated trailing tile (when n_chunks*tiles_per_chunk
            # > num_tiles) stays in range; its contribution is masked in-kernel.
            return (jnp.minimum(pi * tiles_per_chunk + ti, num_tiles - 1), 0)
        dim_sem = (_CORE_PARALLEL, _ARBITRARY)     # explicit 2-TC split (v7x)

    partials = pl.pallas_call(
        kernel,
        out_shape=jax.ShapeDtypeStruct((n_chunks, 1, 1), jnp.float32),
        grid=(n_chunks, tiles_per_chunk),
        in_specs=[
            pl.BlockSpec((tn, C), in_map),
            pl.BlockSpec((tn, C), in_map),
        ],
        out_specs=pl.BlockSpec((1, 1, 1), lambda pi, ti: (pi, 0, 0)),
        compiler_params=pltpu.CompilerParams(
            dimension_semantics=dim_sem,
            vmem_limit_bytes=vmem_limit,
        ),
    )(inputs, target)

    # Tiny scalar epilogue: combine per-chunk partial sums, take the batch mean
    # and form 1 - fbeta (matches torch.mean(...).mul(1+beta2) semantics).
    fbeta = (1.0 + beta2) * jnp.sum(partials) / float(N)
    return (1.0 - fbeta).astype(jnp.float32)


def fbeta_loss_ref(inputs, target, beta=1.0, eps=1e-08):
    """Pure-JAX reference matching the PyTorch module semantics."""
    beta2 = beta ** 2
    s = jax.nn.sigmoid(inputs.astype(jnp.float32))
    t = target.astype(jnp.float32)
    tp = jnp.sum(s * t, axis=1)
    precision = tp / (jnp.sum(s, axis=1) + eps)
    recall = tp / (jnp.sum(t, axis=1) + eps)
    fbeta = jnp.mean((precision * recall)
                     / (precision * beta2 + recall + eps) * (1 + beta2))
    return 1.0 - fbeta


if __name__ == "__main__":
    key = jax.random.PRNGKey(0)
    k1, k2, k3, k4, k5, k6 = jax.random.split(key, 6)

    # 1) Small shape consistent with the module: (batch, classes).
    N, C = 8, 32
    inputs = jax.random.normal(k1, (N, C), dtype=jnp.float32)
    target = (jax.random.uniform(k2, (N, C)) > 0.5).astype(jnp.float32)

    loss = jax.block_until_ready(fbeta_loss(inputs, target, beta=1.0))
    ref = fbeta_loss_ref(inputs, target, beta=1.0)
    assert jnp.allclose(loss, ref, atol=1e-5, rtol=1e-5), (loss, ref)

    # 2) Multi-tile / ragged-batch / narrow-dtype path (forced small tiles).
    N2, C2 = 200, 96
    inputs2 = jax.random.normal(k3, (N2, C2), dtype=jnp.bfloat16)
    target2 = (jax.random.uniform(k4, (N2, C2)) > 0.5).astype(jnp.float32)
    loss2 = jax.block_until_ready(
        fbeta_loss(inputs2, target2, beta=2.0, max_tile_rows=64))
    ref2 = fbeta_loss_ref(inputs2, target2, beta=2.0)
    assert jnp.allclose(loss2, ref2, atol=1e-4, rtol=1e-4), (loss2, ref2)

    # 3) Recommended storage dtypes: bf16 logits + int8 binary targets
    #    (kernel upcasts on-chip; no wrapper-side cast).
    N3, C3 = 96, 128
    inputs3 = jax.random.normal(k5, (N3, C3), dtype=jnp.bfloat16)
    target3 = (jax.random.uniform(k6, (N3, C3)) > 0.5).astype(jnp.int8)
    loss3 = jax.block_until_ready(fbeta_loss(inputs3, target3, beta=1.0))
    ref3 = fbeta_loss_ref(inputs3, target3, beta=1.0)
    assert jnp.allclose(loss3, ref3, atol=1e-4, rtol=1e-4), (loss3, ref3)

    print("KERNEL_OK")
</pallas_src>

<mosaic_0001>
module attributes {stable_mosaic.version = 11 : i64} {
  func.func @fbeta_kernel(%arg0: i32, %arg1: i32, %arg2: memref<8x32xf32, #tpu.memory_space<vmem>>, %arg3: memref<8x32xf32, #tpu.memory_space<vmem>>, %arg4: memref<1x1x1xf32, #tpu.memory_space<vmem>>) attributes {dimension_semantics = [#tpu.dimension_semantics<arbitrary>, #tpu.dimension_semantics<arbitrary>], iteration_bounds = array<i64: 1, 1>, scalar_prefetch = 0 : i64, scratch_operands = 0 : i64, tpu.core_type = #tpu.core_type<tc>, window_params = [{transform_indices = @transform_0, window_bounds = array<i64: 8, 32>}, {transform_indices = @transform_1, window_bounds = array<i64: 8, 32>}, {transform_indices = @transform_2, window_bounds = array<i64: 1, 1, 1>}]} {
    %c0_i32 = arith.constant 0 : i32
    %0 = arith.cmpi eq, %arg1, %c0_i32 : i32
    %1 = arith.extui %0 : i1 to i32
    %c0_i32_0 = arith.constant 0 : i32
    %2 = arith.cmpi ne, %1, %c0_i32_0 : i32
    scf.if %2 {
      %cst_18 = arith.constant 0.000000e+00 : f32
      %38 = vector.broadcast %cst_18 : f32 to vector<1x1x1xf32>
      %c0_19 = arith.constant 0 : index
      %c0_20 = arith.constant 0 : index
      %c0_21 = arith.constant 0 : index
      %39 = vector.load %arg4[%c0_19, %c0_20, %c0_21] : memref<1x1x1xf32, #tpu.memory_space<vmem>>, vector<1x1x1xf32>
      tpu.vector_store %arg4[%c0_19, %c0_20, %c0_21], %38 {strides = array<i32>} : memref<1x1x1xf32, #tpu.memory_space<vmem>>, vector<1x1x1xf32>,
    } else {
    }
    %c0 = arith.constant 0 : index
    %c0_1 = arith.constant 0 : index
    %3 = vector.load %arg2[%c0, %c0_1] : memref<8x32xf32, #tpu.memory_space<vmem>>, vector<8x32xf32>
    %c0_2 = arith.constant 0 : index
    %c0_3 = arith.constant 0 : index
    %4 = vector.load %arg3[%c0_2, %c0_3] : memref<8x32xf32, #tpu.memory_space<vmem>>, vector<8x32xf32>
    %5 = arith.negf %3 : vector<8x32xf32>
    %6 = math.exp %5 : vector<8x32xf32>
    %cst = arith.constant 1.000000e+00 : f32
    %7 = vector.broadcast %cst : f32 to vector<8x32xf32>
    %8 = arith.addf %7, %6 : vector<8x32xf32>
    %9 = arith.divf %7, %8 : vector<8x32xf32>
    %10 = arith.mulf %9, %4 : vector<8x32xf32>
    %cst_4 = arith.constant dense<0.000000e+00> : vector<8xf32>
    %11 = vector.multi_reduction <add>, %10, %cst_4 [1] : vector<8x32xf32> to vector<8xf32>
    %12 = vector.shape_cast %11 : vector<8xf32> to vector<8x1xf32>
    %cst_5 = arith.constant dense<0.000000e+00> : vector<8xf32>
    %13 = vector.multi_reduction <add>, %9, %cst_5 [1] : vector<8x32xf32> to vector<8xf32>
    %14 = vector.shape_cast %13 : vector<8xf32> to vector<8x1xf32>
    %cst_6 = arith.constant dense<0.000000e+00> : vector<8xf32>
    %15 = vector.multi_reduction <add>, %4, %cst_6 [1] : vector<8x32xf32> to vector<8xf32>
    %16 = vector.shape_cast %15 : vector<8xf32> to vector<8x1xf32>
    %cst_7 = arith.constant 9.99999993E-9 : f32
    %17 = vector.broadcast %cst_7 : f32 to vector<8x1xf32>
    %18 = arith.addf %14, %17 : vector<8x1xf32>
    %19 = arith.divf %12, %18 : vector<8x1xf32>
    %cst_8 = arith.constant 9.99999993E-9 : f32
    %20 = vector.broadcast %cst_8 : f32 to vector<8x1xf32>
    %21 = arith.addf %16, %20 : vector<8x1xf32>
    %22 = arith.divf %12, %21 : vector<8x1xf32>
    %23 = arith.mulf %19, %22 : vector<8x1xf32>
    %cst_9 = arith.constant 1.000000e+00 : f32
    %24 = vector.broadcast %cst_9 : f32 to vector<8x1xf32>
    %25 = arith.mulf %19, %24 : vector<8x1xf32>
    %26 = arith.addf %25, %22 : vector<8x1xf32>
    %cst_10 = arith.constant 9.99999993E-9 : f32
    %27 = vector.broadcast %cst_10 : f32 to vector<8x1xf32>
    %28 = arith.addf %26, %27 : vector<8x1xf32>
    %29 = arith.divf %23, %28 : vector<8x1xf32>
    %c0_11 = arith.constant 0 : index
    %c0_12 = arith.constant 0 : index
    %c0_13 = arith.constant 0 : index
    %30 = vector.load %arg4[%c0_11, %c0_12, %c0_13] : memref<1x1x1xf32, #tpu.memory_space<vmem>>, vector<1x1x1xf32>
    %31 = vector.shape_cast %29 : vector<8x1xf32> to vector<1x8x1xf32>
    %cst_14 = arith.constant dense<0.000000e+00> : vector<1xf32>
    %32 = vector.multi_reduction <add>, %31, %cst_14 [1, 2] : vector<1x8x1xf32> to vector<1xf32>
    %33 = vector.shape_cast %32 : vector<1xf32> to vector<1x1x1xf32>
    %34 = vector.extract %33[0, 0, 0] : f32 from vector<1x1x1xf32>
    %35 = vector.broadcast %34 : f32 to vector<1x1x1xf32>
    %36 = arith.addf %30, %35 : vector<1x1x1xf32>
    %c0_15 = arith.constant 0 : index
    %c0_16 = arith.constant 0 : index
    %c0_17 = arith.constant 0 : index
    %37 = vector.load %arg4[%c0_15, %c0_16, %c0_17] : memref<1x1x1xf32, #tpu.memory_space<vmem>>, vector<1x1x1xf32>
    tpu.vector_store %arg4[%c0_15, %c0_16, %c0_17], %36 {strides = array<i32>} : memref<1x1x1xf32, #tpu.memory_space<vmem>>, vector<1x1x1xf32>,
    return
  }
  func.func @transform_0(%arg0: i32, %arg1: i32) -> (i32, i32) {
    %c0_i32 = arith.constant 0 : i32
    %c0_i32_0 = arith.constant 0 : i32
    return %arg1, %c0_i32 : i32, i32
  }
  func.func @transform_1(%arg0: i32, %arg1: i32) -> (i32, i32) {
    %c0_i32 = arith.constant 0 : i32
    %c0_i32_0 = arith.constant 0 : i32
    return %arg1, %c0_i32 : i32, i32
  }
  func.func @transform_2(%arg0: i32, %arg1: i32) -> (i32, i32, i32) {
    %c0_i32 = arith.constant 0 : i32
    %c0_i32_0 = arith.constant 0 : i32
    %c0_i32_1 = arith.constant 0 : i32
    return %arg0, %c0_i32, %c0_i32_0 : i32, i32, i32
  }
}

</mosaic_0001>

<bundles_post_ra>
// kernel: tpu_custom_call.1
= control target key start
LH: loop header
LB: loop body
LE: loop exit
PB: predicated region body
PF: predicated region fallthrough
CT: control target
= control target key end

     0   :  { %7 = vsyncpa [#allocation3], 0  ;;  %s250_s0 = inlined_call_operand.hbm [shape: f32[8,32], index: 0, kind: input, shape index: {}]   ;;  %s251_s1 = inlined_call_operand.hbm [shape: f32[8,32], index: 1, kind: input, shape index: {}]   ;;  %s252_s2 = inlined_call_operand.hbm [shape: f32[1,1,1], index: 2, kind: output, shape index: {}]  }
   0x1   :  { %8 = vsyncpa [#allocation6], 0 }
   0x2   :  { %9 = vsyncpa [#allocation4], 0  ;;  %s193_s9 = smov [#allocation2]   ;;  %s194_s11 = smov [#allocation5]  }
   0x3   :  { %s16_s10 = sshll.u32 %s193_s9, 4  ;;  %s26_s12 = sshll.u32 %s194_s11, 4  ;;  %s17_s10 = int_to_ptr.vmem [resolvable:$true] %s16_s10  ;;  %s27_s12 = int_to_ptr.vmem [resolvable:$true] %s26_s12 }
   0x4   :  { %s121_s15 = scalar_lea.hbm %s250_s0, 128 }
   0x5   :  { %p122_p0 = scmp.ne.s32.totalorder %s250_s0, %s121_s15  ;;  %p125_p1 = scmp.lt.u32.totalorder %s121_s15, %s250_s0 }
   0x7   :  { %p127_p2 = pnand %p125_p1, %p122_p0 }
   0x9   :  { %130 = shalt.err (!%p127_p2)
}
   0xa   :  { %s131_s20 = scalar_lea.vmem %s17_s10, 128  ;;  %p136_p4 = scmp.lt.s32.totalorder %s17_s10, %s17_s10 }
   0xb   :  { %p132_p3 = scmp.ne.s32.totalorder %s17_s10, %s131_s20  ;;  %p137_p5 = scmp.lt.s32.totalorder %s131_s20, %s131_s20 }
   0xd   :  { %p138_p6 = por %p137_p5, %p136_p4 }
   0xf   :  { %p139_p7 = pnand %p138_p6, %p132_p3 }
  0x11   :  { %142 = shalt.err (!%p139_p7)
}
  0x12   :  { %19 = dma.hbm_to_vmem [thread:$0]  %s250_s0, 128, %s17_s10, [#allocation3]  }
  0x13   :  { %s143_s25 = scalar_lea.hbm %s251_s1, 128 }
  0x14   :  { %p144_p8 = scmp.ne.s32.totalorder %s251_s1, %s143_s25  ;;  %p147_p9 = scmp.lt.u32.totalorder %s143_s25, %s251_s1 }
  0x16   :  { %p149_p10 = pnand %p147_p9, %p144_p8 }
  0x18   :  { %152 = shalt.err (!%p149_p10)
}
  0x19   :  { %s153_s30 = scalar_lea.vmem %s27_s12, 128  ;;  %p158_p12 = scmp.lt.s32.totalorder %s27_s12, %s27_s12 }
  0x1a   :  { %p154_p11 = scmp.ne.s32.totalorder %s27_s12, %s153_s30  ;;  %p159_p13 = scmp.lt.s32.totalorder %s153_s30, %s153_s30 }
  0x1c   :  { %p160_p0 = por %p159_p13, %p158_p12 }
  0x1e   :  { %p161_p1 = pnand %p160_p0, %p154_p11 }
  0x20   :  { %164 = shalt.err (!%p161_p1)
}
  0x21   :  { %29 = dma.hbm_to_vmem [thread:$0]  %s251_s1, 128, %s27_s12, [#allocation6]  }
  0x22   :  { %187 = dma.done.wait [#allocation3], 128  }
  0x23   :  { %188 = vsyncadd [#allocation3], 4294967168 }
  0x24   :  { %189 = dma.done.wait [#allocation6], 128  }
  0x25   :  { %190 = vsyncadd [#allocation6], 4294967168  ;;  %vm40_vm0 = vcmask 0   ;;  %v195_v0 = vmov 0.0   ;;  %v42_v1 = vld [vmem:[#allocation2] sm:$0xff]  ;;  %vm51_vm1 = vcmask 261120  }
  0x26   :  { %41 = vst.msk [vmem:[#allocation7] sm:$0x1] %vm40_vm0, %v195_v0  ;;  %v104_v2 = vmul.f32 -1.442695, %v42_v1  ;;  %v43_v6 = vld [vmem:[#allocation5] sm:$0xff]  ;;  %vm73_vm2 = vcmask 7168  }
  0x27   :  { %v58_v9 = vsel %vm51_vm1, %v43_v6, 0.0  ;;  %s196_s1 = smov [#allocation7]  }
  0x28   :  { %111 = vpow2.f32 %v104_v2  ;;  %s94_s4 = sshll.u32 %s196_s1, 4  ;;  %s95_s4 = int_to_ptr.vmem [resolvable:$true] %s94_s4 }
  0x29   :  { %s165_s6 = scalar_lea.vmem %s95_s4, 16  ;;  %s169_s7 = scalar_lea.vmem %s95_s4, 32 }
  0x2a   :  { %p166_p2 = scmp.ne.s32.totalorder %s95_s4, %s165_s6  ;;  %p170_p3 = scmp.lt.s32.totalorder %s95_s4, %s95_s4 }
  0x2b   :  { %p171_p4 = scmp.lt.s32.totalorder %s169_s7, %s165_s6 }
  0x2d   :  { %v72_v33 = vld [vmem:[#allocation7] sm:$0x1]  ;;  %p172_p5 = por %p171_p4, %p170_p3 }
  0x2f   :  { %p173_p6 = pnand %p172_p5, %p166_p2 }
  0x32   :  { %v112_v3 = vpop.eup %111 }
  0x33   :  { %v47_v4 = vadd.f32 1.0, %v112_v3 }
  0x35   :  { %113 = vrcp.f32 %v47_v4 }
  0x3f   :  { %v114_v5 = vpop.eup %113 }
  0x40   :  { %v55_v7 = vsel %vm51_vm1, %v114_v5, 0.0  ;;  %v50_v8 = vmul.f32 %v114_v5, %v43_v6 }
  0x41   :  { %56 = vadd.xlane.f32.xlu0 %v55_v7 }
  0x42   :  { %v52_v10 = vsel %vm51_vm1, %v50_v8, 0.0 }
  0x43   :  { %53 = vadd.xlane.f32.xlu1 %v52_v10 }
  0x45   :  { %59 = vadd.xlane.f32.xlu0 %v58_v9 }
  0xce   :  { %v57_v11 = vpop.xlane.xlu0 %56 }
  0xcf   :  { %v61_v12 = vadd.f32 1e-08, %v57_v11 }
  0xd0   :  { %v54_v16 = vpop.xlane.xlu1 %53 }
  0xd1   :  { %115 = vrcp.f32 %v61_v12 }
  0xd2   :  { %v60_v13 = vpop.xlane.xlu0 %59 }
  0xd3   :  { %v64_v14 = vadd.f32 1e-08, %v60_v13 }
  0xd5   :  { %117 = vrcp.f32 %v64_v14 }
  0xdb   :  { %v116_v15 = vpop.eup %115 }
  0xdc   :  { %v63_v18 = vmul.f32 %v116_v15, %v54_v16 }
  0xdf   :  { %v118_v17 = vpop.eup %117 }
  0xe0   :  { %v66_v19 = vmul.f32 %v118_v17, %v54_v16 }
  0xe2   :  { %v68_v20 = vadd.f32 %v66_v19, %v63_v18  ;;  %v67_v22 = vmul.f32 %v66_v19, %v63_v18 }
  0xe4   :  { %v69_v21 = vadd.f32 1e-08, %v68_v20 }
  0xe6   :  { %119 = vrcp.f32 %v69_v21 }
  0xf0   :  { %v120_v23 = vpop.eup %119 }
  0xf1   :  { %v71_v24 = vmul.f32 %v120_v23, %v67_v22 }
  0xf3   :  { %v74_v25 = vsel %vm73_vm2, %v71_v24, 0.0 }
  0xf4   :  { %75 = vadd.xlane.f32.xlu1 %v74_v25 }
 0x181   :  { %v76_v26 = vpop.xlane.xlu1 %75 }
 0x182   :  { %v77_v27 = vrot.slane %v76_v26, 4 }
 0x184   :  { %v78_v28 = vadd.f32 %v77_v27, %v76_v26 }
 0x186   :  { %v79_v29 = vrot.slane %v78_v28, 2 }
 0x188   :  { %v80_v30 = vadd.f32 %v79_v29, %v78_v28 }
 0x18a   :  { %v81_v31 = vrot.slane %v80_v30, 1 }
 0x18c   :  { %v82_v32 = vadd.f32 %v81_v31, %v80_v30 }
 0x18e   :  { %105 = vpush %v82_v32 }
 0x1bf   :  { %s106_s5 = spop %105 }
 0x1c0   :  { %v84_v34 = vstv %s106_s5 }
 0x1c1   :  { %v85_v35 = vadd.f32 %v84_v34, %v72_v33 }
 0x1c3   :  { %87 = vst.msk [vmem:[#allocation7] sm:$0x1] %vm40_vm0, %v85_v35 }
 0x1c4   :  { %176 = shalt.err (!%p173_p6)
}
 0x1c5   :  { %s177_s10 = scalar_lea.hbm %s252_s2, 16 }
 0x1c6   :  { %p178_p7 = scmp.ne.s32.totalorder %s252_s2, %s177_s10  ;;  %p181_p8 = scmp.lt.u32.totalorder %s177_s10, %s252_s2 }
 0x1c8   :  { %p183_p9 = pnand %p181_p8, %p178_p7 }
 0x1ca   :  { %186 = shalt.err (!%p183_p9)
}
 0x1cb   :  { %97 = dma.vmem_to_hbm [thread:$0]  %s95_s4, 16, %s252_s2, [#allocation4]  }
 0x1cc   :  { %191 = dma.done.wait [#allocation4], 16  }
 0x1cd   :  { %192 = vsyncadd [#allocation4], 4294967280 }
 0x1ce   :  { %101 = vsyncpa [#allocation3], 1 }
 0x1cf   :  { %102 = vsyncpa [#allocation6], 1 }
 0x1d0   :  { %103 = vsyncpa [#allocation4], 1 }

</bundles_post_ra>
